<compile_context>
chip_gen: v6e
topology: v6e:2x2x1
jax: 0.10.0
libtpu: 0.0.40
codegen_flags: <defaults>
</compile_context>

<pallas_src>
import functools
import math

import jax
import jax.numpy as jnp
from jax import lax
from jax.experimental import pallas as pl
from jax.experimental.pallas import tpu as pltpu

IN_CHANNELS = 2          # density channel + value channel (as in PyTorch module)
_FAR_SENTINEL = 1e30     # (sentinel - t)^2 overflows to +inf -> RBF weight == 0


def _round_up(v, m):
    return ((v + m - 1) // m) * m


def conv_deep_set_kernel(xy_ref, t_ref, coef_ref, w_ref, b_ref, o_ref,
                         density_acc, numer_acc, *, tn_sub, n_sub,
                         use_bf16_exp):
    """One (batch, M-tile, N-block) grid step.

    xy_ref:   (1, tn_block, 2) packed context [x | y] (padded: x=sentinel, y=0)
    t_ref:    (1, 1, tm)       target locations (lane-dense row)
    coef_ref: (2,) SMEM        per-channel RBF coefficients  -0.5 / scale_k^2
    w_ref:    (C, 2)           Linear weight
    b_ref:    (C, 1)           Linear bias (column)
    o_ref:    (1, C, tm)       channel-major output slab
    density_acc / numer_acc: (1, tm) f32 VMEM accumulators across N blocks
    """
    n = pl.program_id(2)

    @pl.when(n == 0)
    def _init():
        density_acc[...] = jnp.zeros_like(density_acc)
        numer_acc[...] = jnp.zeros_like(numer_acc)

    t = t_ref[0]               # (1, tm)
    c0 = coef_ref[0]           # density-channel coefficient (SMEM scalar)
    c1 = coef_ref[1]           # value-channel coefficient   (SMEM scalar)

    def body(i, carry):
        dens, num = carry
        start = pl.multiple_of(i * tn_sub, tn_sub)
        chunk = xy_ref[0, pl.ds(start, tn_sub), :]       # (tn_sub, 2)
        xc = chunk[:, 0:1]                               # (tn_sub, 1)
        yc = chunk[:, 1:2]                               # (tn_sub, 1)
        # Pairwise squared distances by pure broadcasting; no transpose.
        d = (xc - t) ** 2                                # (tn_sub, tm)
        e0 = d * c0
        e1 = d * c1
        if use_bf16_exp:
            # EUP bf16 exp runs ~2x the f32 rate on v6e/v7x; do NOT use on v5e.
            w0 = jnp.exp(e0.astype(jnp.bfloat16)).astype(jnp.float32)
            w1 = jnp.exp(e1.astype(jnp.bfloat16)).astype(jnp.float32)
        else:
            w0 = jnp.exp(e0)
            w1 = jnp.exp(e1)
        # Sublane reduce -> lane-dense (1, tm) partial sums.
        dens = dens + jnp.sum(w0, axis=0, keepdims=True)
        num = num + jnp.sum(w1 * yc, axis=0, keepdims=True)
        return dens, num

    zeros = jnp.zeros(density_acc.shape, jnp.float32)
    dens, num = lax.fori_loop(0, n_sub, body, (zeros, zeros), unroll=True)
    density_acc[...] += dens
    numer_acc[...] += num

    @pl.when(n == pl.num_programs(2) - 1)
    def _finalize():
        density = density_acc[...]                       # (1, tm)
        # Exact divide: only a (1, tm) row, off the EUP critical path.
        conv = numer_acc[...] / (density + 1e-8)         # (1, tm)
        # Point-wise Linear(2 -> C) as two broadcast FMAs, channel-major.
        out = (w_ref[:, 0:1] * density + w_ref[:, 1:2] * conv
               + b_ref[...])                             # (C, tm)
        o_ref[0] = out.astype(o_ref.dtype)


@functools.partial(
    jax.jit, static_argnames=("tn_sub", "tn_block", "tm", "use_bf16_exp"))
def conv_deep_set(x, y, t, sigma, W, bias, *, tn_sub=256, tn_block=2048,
                  tm=2048, use_bf16_exp=False):
    """ConvDeepSet forward.  x,y: (B,N,1); t: (B,M,1); W: (C,2); bias: (C,)."""
    x = x.astype(jnp.float32)
    y = y.astype(jnp.float32)
    t = t.astype(jnp.float32)

    B, N, _ = x.shape
    M = t.shape[1]
    C = W.shape[0]

    # Per-channel RBF coefficients: -0.5 / exp(sigma)^2 = -0.5 * exp(-2*sigma).
    coefs = -0.5 * jnp.exp(-2.0 * sigma.astype(jnp.float32))
    # Guard the degenerate c_k == -0.0 case (huge sigma): keep c_k <= -tiny so
    # sentinel rows give c_k * inf = -inf -> exp = 0, never NaN.
    coefs = jnp.minimum(
        coefs, -jnp.finfo(jnp.float32).tiny).reshape(IN_CHANNELS)

    # Tile sizes (shrink to the problem if it is small; keep (8,128) legal).
    tn_sub = min(tn_sub, _round_up(N, 8))                 # elementwise chunk
    tn_block = max(tn_sub, min(tn_block, _round_up(N, tn_sub)))
    tn_block = _round_up(tn_block, tn_sub)                 # DMA block over N
    tm = min(tm, _round_up(M, 128))
    N_pad = _round_up(N, tn_block)
    M_pad = _round_up(M, tm)
    n_sub = tn_block // tn_sub

    # Pad contexts: sentinel location (-> zero RBF weight) / zero values, then
    # pack [x | y] so one BlockSpec covers both (half the context DMAs).
    if N_pad != N:
        x = jnp.pad(x, ((0, 0), (0, N_pad - N), (0, 0)),
                    constant_values=_FAR_SENTINEL)
        y = jnp.pad(y, ((0, 0), (0, N_pad - N), (0, 0)))
    xy = jnp.concatenate([x, y], axis=2)                   # (B, N_pad, 2)

    # Lane-dense target row; pad M (extra targets are sliced off afterwards).
    t_row = jnp.transpose(t, (0, 2, 1))                    # (B, 1, M)
    if M_pad != M:
        t_row = jnp.pad(t_row, ((0, 0), (0, 0), (0, M_pad - M)))

    w = W.astype(jnp.float32)                              # (C, 2)
    b_col = bias.astype(jnp.float32).reshape(C, 1)         # (C, 1)

    # Reduction axis (N blocks) last; B and M-tiles parallel.  On v7x prefer a
    # tm such that B * (M_pad // tm) >= 2 so both TensorCores get work.
    grid = (B, M_pad // tm, N_pad // tn_block)

    kernel = functools.partial(conv_deep_set_kernel, tn_sub=tn_sub,
                               n_sub=n_sub, use_bf16_exp=use_bf16_exp)

    out_cm = pl.pallas_call(
        kernel,
        out_shape=jax.ShapeDtypeStruct((B, C, M_pad), jnp.float32),
        grid=grid,
        in_specs=[
            pl.BlockSpec((1, tn_block, 2), lambda b, mi, ni: (b, ni, 0)),  # xy
            pl.BlockSpec((1, 1, tm), lambda b, mi, ni: (b, 0, mi)),        # t
            pl.BlockSpec(memory_space=pltpu.MemorySpace.SMEM),             # coefs
            pl.BlockSpec((C, IN_CHANNELS), lambda b, mi, ni: (0, 0)),      # W
            pl.BlockSpec((C, 1), lambda b, mi, ni: (0, 0)),                # bias
        ],
        out_specs=pl.BlockSpec((1, C, tm), lambda b, mi, ni: (b, 0, mi)),
        scratch_shapes=[
            pltpu.VMEM((1, tm), jnp.float32),   # density accumulator
            pltpu.VMEM((1, tm), jnp.float32),   # numerator accumulator
        ],
        compiler_params=pltpu.CompilerParams(
            dimension_semantics=("parallel", "parallel", "arbitrary"),
            vmem_limit_bytes=48 * 1024 * 1024),
    )(xy, t_row, coefs, w, b_col)

    # Drop target padding and restore the module's (B, M, C) convention.
    # Consumers that accept channel-major (B, C, M) should use out_cm[..., :M]
    # directly and skip this extra HBM round-trip (notable on v5e).
    out = out_cm[:, :, :M]
    return jnp.transpose(out, (0, 2, 1))


def reference(x, y, t, sigma, W, bias):
    """Pure-JAX transliteration of the PyTorch forward for verification."""
    B, N, _ = x.shape
    dists = (x - jnp.transpose(t, (0, 2, 1))) ** 2                   # (B, N, M)
    scales = jnp.exp(sigma)[None, None, None, :]                     # (1,1,1,2)
    wt = jnp.exp(-0.5 * dists[..., None] / scales ** 2)              # (B,N,M,2)
    density = jnp.ones((B, N, 1), dtype=x.dtype)
    y_out = jnp.concatenate([density, y], axis=2)                    # (B, N, 2)
    y_out = y_out[:, :, None, :] * wt                                # (B,N,M,2)
    y_out = y_out.sum(1)                                             # (B, M, 2)
    d, c = y_out[..., :1], y_out[..., 1:]
    feat = jnp.concatenate([d, c / (d + 1e-8)], axis=-1)             # (B, M, 2)
    return feat @ W.T + bias[None, None, :]                          # (B, M, C)


if __name__ == "__main__":
    B, N, M, C = 2, 8, 16, 8
    init_length_scale = 0.1

    key = jax.random.PRNGKey(0)
    kx, ky, kw, kb = jax.random.split(key, 4)

    x = jax.random.uniform(kx, (B, N, 1), jnp.float32, -2.0, 2.0)
    y = jax.random.normal(ky, (B, N, 1), jnp.float32)
    t = jnp.asarray(
        jnp.broadcast_to(
            jnp.linspace(-2.0, 2.0, M, dtype=jnp.float32)[None, :, None],
            (B, M, 1)))

    # Parameters (deterministic synthetic init; nn.Linear(2, C) shapes).
    sigma = jnp.full((IN_CHANNELS,), math.log(init_length_scale), jnp.float32)
    W = 0.1 * jax.random.normal(kw, (C, IN_CHANNELS), jnp.float32)   # (out, in)
    bias = 0.1 * jax.random.normal(kb, (C,), jnp.float32)

    out = conv_deep_set(x, y, t, sigma, W, bias)
    out = jax.block_until_ready(out)

    ref = reference(x, y, t, sigma, W, bias)
    assert out.shape == (B, M, C), out.shape
    if not jnp.allclose(out, ref, atol=1e-4, rtol=1e-4):
        raise AssertionError(
            f"mismatch: max abs err {jnp.max(jnp.abs(out - ref))}")
    print("KERNEL_OK")
</pallas_src>

<mosaic_0001>
module attributes {stable_mosaic.version = 11 : i64} {
  func.func @conv_deep_set_kernel(%arg0: i32, %arg1: i32, %arg2: i32, %arg3: memref<1x8x2xf32, #tpu.memory_space<vmem>>, %arg4: memref<1x1x128xf32, #tpu.memory_space<vmem>>, %arg5: memref<2xf32, #tpu.memory_space<smem>>, %arg6: memref<8x2xf32, #tpu.memory_space<vmem>>, %arg7: memref<8x1xf32, #tpu.memory_space<vmem>>, %arg8: memref<1x8x128xf32, #tpu.memory_space<vmem>>, %arg9: memref<1x128xf32, #tpu.memory_space<vmem>>, %arg10: memref<1x128xf32, #tpu.memory_space<vmem>>) attributes {dimension_semantics = [#tpu.dimension_semantics<parallel>, #tpu.dimension_semantics<parallel>, #tpu.dimension_semantics<arbitrary>], iteration_bounds = array<i64: 2, 1, 1>, scalar_prefetch = 0 : i64, scratch_operands = 2 : i64, tpu.core_type = #tpu.core_type<tc>, window_params = [{transform_indices = @transform_0, window_bounds = array<i64: 1, 8, 2>}, {transform_indices = @transform_1, window_bounds = array<i64: 1, 1, 128>}, {transform_indices = @transform_2, window_bounds = array<i64: 2>}, {pipeline_mode = #tpu.pipeline_mode<synchronous>, transform_indices = @transform_3, window_bounds = array<i64: 8, 2>}, {pipeline_mode = #tpu.pipeline_mode<synchronous>, transform_indices = @transform_4, window_bounds = array<i64: 8, 1>}, {transform_indices = @transform_5, window_bounds = array<i64: 1, 8, 128>}]} {
    %c0_i32 = arith.constant 0 : i32
    %0 = arith.cmpi eq, %arg2, %c0_i32 : i32
    %1 = arith.extui %0 : i1 to i32
    %c0_i32_0 = arith.constant 0 : i32
    %2 = arith.cmpi ne, %1, %c0_i32_0 : i32
    scf.if %2 {
      %cst_19 = arith.constant 0.000000e+00 : f32
      %42 = vector.broadcast %cst_19 : f32 to vector<1x128xf32>
      %c0_20 = arith.constant 0 : index
      %c0_21 = arith.constant 0 : index
      %43 = vector.load %arg9[%c0_20, %c0_21] : memref<1x128xf32, #tpu.memory_space<vmem>>, vector<1x128xf32>
      tpu.vector_store %arg9[%c0_20, %c0_21], %42 {strides = array<i32>} : memref<1x128xf32, #tpu.memory_space<vmem>>, vector<1x128xf32>,
      %cst_22 = arith.constant 0.000000e+00 : f32
      %44 = vector.broadcast %cst_22 : f32 to vector<1x128xf32>
      %c0_23 = arith.constant 0 : index
      %c0_24 = arith.constant 0 : index
      %45 = vector.load %arg10[%c0_23, %c0_24] : memref<1x128xf32, #tpu.memory_space<vmem>>, vector<1x128xf32>
      tpu.vector_store %arg10[%c0_23, %c0_24], %44 {strides = array<i32>} : memref<1x128xf32, #tpu.memory_space<vmem>>, vector<1x128xf32>,
    } else {
    }
    %c0 = arith.constant 0 : index
    %c0_1 = arith.constant 0 : index
    %c0_2 = arith.constant 0 : index
    %3 = vector.load %arg4[%c0, %c0_1, %c0_2] : memref<1x1x128xf32, #tpu.memory_space<vmem>>, vector<1x1x128xf32>
    %4 = vector.shape_cast %3 : vector<1x1x128xf32> to vector<1x128xf32>
    %c0_3 = arith.constant 0 : index
    %5 = memref.load %arg5[%c0_3] : memref<2xf32, #tpu.memory_space<smem>>
    %c1 = arith.constant 1 : index
    %6 = memref.load %arg5[%c1] : memref<2xf32, #tpu.memory_space<smem>>
    %cst = arith.constant 0.000000e+00 : f32
    %7 = vector.broadcast %cst : f32 to vector<1x128xf32>
    %c0_i32_4 = arith.constant 0 : i32
    %c8_i32 = arith.constant 8 : i32
    %8 = arith.muli %c0_i32_4, %c8_i32 : i32
    %9 = tpu.assume_multiple %8, 8 : i32
    %c0_5 = arith.constant 0 : index
    %10 = arith.index_cast %9 : i32 to index
    %c0_6 = arith.constant 0 : index
    %11 = vector.load %arg3[%c0_5, %10, %c0_6] : memref<1x8x2xf32, #tpu.memory_space<vmem>>, vector<1x8x2xf32>
    %12 = vector.shape_cast %11 : vector<1x8x2xf32> to vector<8x2xf32>
    %13 = vector.extract_strided_slice %12 {offsets = [0, 0], sizes = [8, 1], strides = [1, 1]} : vector<8x2xf32> to vector<8x1xf32>
    %14 = vector.extract_strided_slice %12 {offsets = [0, 1], sizes = [8, 1], strides = [1, 1]} : vector<8x2xf32> to vector<8x1xf32>
    %15 = vector.broadcast %13 : vector<8x1xf32> to vector<8x128xf32>
    %16 = vector.broadcast %4 : vector<1x128xf32> to vector<8x128xf32>
    %17 = arith.subf %15, %16 : vector<8x128xf32>
    %18 = arith.mulf %17, %17 : vector<8x128xf32>
    %19 = vector.broadcast %5 : f32 to vector<8x128xf32>
    %20 = arith.mulf %18, %19 : vector<8x128xf32>
    %21 = vector.broadcast %6 : f32 to vector<8x128xf32>
    %22 = arith.mulf %18, %21 : vector<8x128xf32>
    %23 = math.exp %20 : vector<8x128xf32>
    %24 = math.exp %22 : vector<8x128xf32>
    %cst_7 = arith.constant dense<0.000000e+00> : vector<128xf32>
    %25 = vector.multi_reduction <add>, %23, %cst_7 [0] : vector<8x128xf32> to vector<128xf32>
    %26 = vector.shape_cast %25 : vector<128xf32> to vector<1x128xf32>
    %27 = arith.addf %7, %26 : vector<1x128xf32>
    %28 = vector.broadcast %14 : vector<8x1xf32> to vector<8x128xf32>
    %29 = arith.mulf %24, %28 : vector<8x128xf32>
    %cst_8 = arith.constant dense<0.000000e+00> : vector<128xf32>
    %30 = vector.multi_reduction <add>, %29, %cst_8 [0] : vector<8x128xf32> to vector<128xf32>
    %31 = vector.shape_cast %30 : vector<128xf32> to vector<1x128xf32>
    %32 = arith.addf %7, %31 : vector<1x128xf32>
    %c1_i32 = arith.constant 1 : i32
    %c0_9 = arith.constant 0 : index
    %c0_10 = arith.constant 0 : index
    %33 = vector.load %arg9[%c0_9, %c0_10] : memref<1x128xf32, #tpu.memory_space<vmem>>, vector<1x128xf32>
    %34 = arith.addf %33, %27 : vector<1x128xf32>
    %c0_11 = arith.constant 0 : index
    %c0_12 = arith.constant 0 : index
    %35 = vector.load %arg9[%c0_11, %c0_12] : memref<1x128xf32, #tpu.memory_space<vmem>>, vector<1x128xf32>
    tpu.vector_store %arg9[%c0_11, %c0_12], %34 {strides = array<i32>} : memref<1x128xf32, #tpu.memory_space<vmem>>, vector<1x128xf32>,
    %c0_13 = arith.constant 0 : index
    %c0_14 = arith.constant 0 : index
    %36 = vector.load %arg10[%c0_13, %c0_14] : memref<1x128xf32, #tpu.memory_space<vmem>>, vector<1x128xf32>
    %37 = arith.addf %36, %32 : vector<1x128xf32>
    %c0_15 = arith.constant 0 : index
    %c0_16 = arith.constant 0 : index
    %38 = vector.load %arg10[%c0_15, %c0_16] : memref<1x128xf32, #tpu.memory_space<vmem>>, vector<1x128xf32>
    tpu.vector_store %arg10[%c0_15, %c0_16], %37 {strides = array<i32>} : memref<1x128xf32, #tpu.memory_space<vmem>>, vector<1x128xf32>,
    %c0_i32_17 = arith.constant 0 : i32
    %39 = arith.cmpi eq, %arg2, %c0_i32_17 : i32
    %40 = arith.extui %39 : i1 to i32
    %c0_i32_18 = arith.constant 0 : i32
    %41 = arith.cmpi ne, %40, %c0_i32_18 : i32
    scf.if %41 {
      %c0_19 = arith.constant 0 : index
      %c0_20 = arith.constant 0 : index
      %42 = vector.load %arg9[%c0_19, %c0_20] : memref<1x128xf32, #tpu.memory_space<vmem>>, vector<1x128xf32>
      %c0_21 = arith.constant 0 : index
      %c0_22 = arith.constant 0 : index
      %43 = vector.load %arg10[%c0_21, %c0_22] : memref<1x128xf32, #tpu.memory_space<vmem>>, vector<1x128xf32>
      %cst_23 = arith.constant 9.99999993E-9 : f32
      %44 = vector.broadcast %cst_23 : f32 to vector<1x128xf32>
      %45 = arith.addf %42, %44 : vector<1x128xf32>
      %46 = arith.divf %43, %45 : vector<1x128xf32>
      %c0_24 = arith.constant 0 : index
      %c0_25 = arith.constant 0 : index
      %47 = vector.load %arg6[%c0_24, %c0_25] : memref<8x2xf32, #tpu.memory_space<vmem>>, vector<8x1xf32>
      %48 = vector.broadcast %47 : vector<8x1xf32> to vector<8x128xf32>
      %49 = vector.broadcast %42 : vector<1x128xf32> to vector<8x128xf32>
      %50 = arith.mulf %48, %49 : vector<8x128xf32>
      %c0_26 = arith.constant 0 : index
      %c1_27 = arith.constant 1 : index
      %51 = vector.load %arg6[%c0_26, %c1_27] : memref<8x2xf32, #tpu.memory_space<vmem>>, vector<8x1xf32>
      %52 = vector.broadcast %51 : vector<8x1xf32> to vector<8x128xf32>
      %53 = vector.broadcast %46 : vector<1x128xf32> to vector<8x128xf32>
      %54 = arith.mulf %52, %53 : vector<8x128xf32>
      %55 = arith.addf %50, %54 : vector<8x128xf32>
      %c0_28 = arith.constant 0 : index
      %c0_29 = arith.constant 0 : index
      %56 = vector.load %arg7[%c0_28, %c0_29] : memref<8x1xf32, #tpu.memory_space<vmem>>, vector<8x1xf32>
      %57 = vector.broadcast %56 : vector<8x1xf32> to vector<8x128xf32>
      %58 = arith.addf %55, %57 : vector<8x128xf32>
      %c0_30 = arith.constant 0 : index
      %c0_31 = arith.constant 0 : index
      %c0_32 = arith.constant 0 : index
      %59 = vector.load %arg8[%c0_30, %c0_31, %c0_32] : memref<1x8x128xf32, #tpu.memory_space<vmem>>, vector<1x8x128xf32>
      %60 = vector.shape_cast %59 : vector<1x8x128xf32> to vector<8x128xf32>
      %61 = vector.shape_cast %58 : vector<8x128xf32> to vector<1x8x128xf32>
      tpu.vector_store %arg8[%c0_30, %c0_31, %c0_32], %61 {strides = array<i32>} : memref<1x8x128xf32, #tpu.memory_space<vmem>>, vector<1x8x128xf32>,
    } else {
    }
    return
  }
  func.func @transform_0(%arg0: i32, %arg1: i32, %arg2: i32) -> (i32, i32, i32) {
    %c0_i32 = arith.constant 0 : i32
    %c0_i32_0 = arith.constant 0 : i32
    return %arg0, %arg2, %c0_i32 : i32, i32, i32
  }
  func.func @transform_1(%arg0: i32, %arg1: i32, %arg2: i32) -> (i32, i32, i32) {
    %c0_i32 = arith.constant 0 : i32
    %c0_i32_0 = arith.constant 0 : i32
    return %arg0, %c0_i32, %arg1 : i32, i32, i32
  }
  func.func @transform_2(%arg0: i32, %arg1: i32, %arg2: i32) -> i32 {
    %c0_i32 = arith.constant 0 : i32
    %c0_i32_0 = arith.constant 0 : i32
    return %c0_i32 : i32
  }
  func.func @transform_3(%arg0: i32, %arg1: i32, %arg2: i32) -> (i32, i32) {
    %c0_i32 = arith.constant 0 : i32
    %c0_i32_0 = arith.constant 0 : i32
    %c0_i32_1 = arith.constant 0 : i32
    return %c0_i32, %c0_i32_0 : i32, i32
  }
  func.func @transform_4(%arg0: i32, %arg1: i32, %arg2: i32) -> (i32, i32) {
    %c0_i32 = arith.constant 0 : i32
    %c0_i32_0 = arith.constant 0 : i32
    %c0_i32_1 = arith.constant 0 : i32
    return %c0_i32, %c0_i32_0 : i32, i32
  }
  func.func @transform_5(%arg0: i32, %arg1: i32, %arg2: i32) -> (i32, i32, i32) {
    %c0_i32 = arith.constant 0 : i32
    %c0_i32_0 = arith.constant 0 : i32
    return %arg0, %c0_i32, %arg1 : i32, i32, i32
  }
}

</mosaic_0001>

<bundles_post_ra>
// kernel: conv_deep_set.1
= control target key start
LH: loop header
LB: loop body
LE: loop exit
PB: predicated region body
PF: predicated region fallthrough
CT: control target
= control target key end

     0   :  { %10 = vsyncpa [#allocation5], 0  ;;  %s636_s18 = smov 0   ;;  %s638_s19 = smov 0   ;;  %s712_s0 = inlined_call_operand.vmem [shape: f32[2,8,2], index: 0, kind: input, shape index: {}]   ;;  %s713_s1 = inlined_call_operand.vmem [shape: f32[2,1,128], index: 1, kind: input, shape index: {}]   ;;  %s714_s2 = inlined_call_operand.vmem [shape: f32[2], index: 2, kind: input, shape index: {}]   ;;  %s715_s3 = inlined_call_operand.vmem [shape: f32[8,2], index: 3, kind: input, shape index: {}]   ;;  %s716_s4 = inlined_call_operand.vmem [shape: f32[8,1], index: 4, kind: input, shape index: {}]   ;;  %s717_s5 = inlined_call_operand.vmem [shape: f32[2,8,128], index: 5, kind: output, shape index: {}]  }
   0x1   :  { %s640_s20 = smov 0  }
   0x2 LB: > { %s496_s21 = sadd.s32 4294967295, %s600_s20   ;;  %s35_s22 = sadd.s32 1, %s596_s19  ;;  %s600_s20 = sphi %s640_s20, %s16_s20   ;;  %s596_s19 = sphi %s638_s19, %s721_s19   ;;  %s592_s18 = sphi %s636_s18, %s720_s18  }
   0x3   : > { %p37_p0 = scmp.ge.s32.totalorder %s35_s22, 2  ;;  %p498_p1 = scmp.ge.s32.totalorder %s600_s20, 1 }
   0x4   : > { %p187_p2 = scmp.lt.s32.totalorder %s600_s20, 3  ;;  %p661_p4 = scmp.eq.s32.totalorder %s496_s21, 0 }
   0x5   : > { %s723_s22 = smov (%p37_p0, %s35_s22), 0  ;;  %s200_s27 = sshll.u32 %s714_s2, 4  ;;  %s201_s27 = int_to_ptr.vmem [resolvable:$true] %s200_s27 }
   0x6   : > { %p657_p3 = pnand %p498_p1, %p187_p2  ;;  %s559_s28 = scalar_lea.vmem %s201_s27, 16 }
   0x7   : > { %p560_p7 = scmp.ne.s32.totalorder %s201_s27, %s559_s28  ;;  %p567_p11 = scmp.lt.s32.totalorder %s201_s27, %s201_s27 }
   0x8   : > { %p513_p5 = pneg %p657_p3  ;;  %p568_p12 = scmp.lt.s32.totalorder %s559_s28, %s559_s28 }
   0xa   : > { %p514_p6 = pnand %p661_p4, %p513_p5  ;;  %p569_p13 = por %p568_p12, %p567_p11 }
   0xc   : > { %p561_p8 = pneg %p514_p6 }
   0xe   : > { %p562_p9 = pnand %p561_p8, %p560_p7 }
  0x10   : > { %p563_p10 = pneg %p562_p9 }
  0x12   : > { %p570_p0 = pnand %p569_p13, %p563_p10 }
  0x14   : > { %573 = shalt.err (!%p570_p0)
}
  0x15   : > { %s602_s29 = smov [#allocation4]   ;;  %238 = sbr.rel (%p657_p3) target bundleno = 230 (0xe6), region = 40 }
  0x16   : > { %516 = dma.vmem_to_smem (!%p514_p6), %s201_s27, 16, %s602_s29, [#allocation5]  }
  0x1a   : > { %587 = dma.done.wait (%p661_p4), [#allocation5], 16  }
  0x1b   : > { %589 = vsyncadd (%p661_p4), [#allocation5], 4294967280 }
  0x1c   : > { %244 = sfence }
  0x1d   : > { %p277_p1 = scmp.lt.s32.totalorder %s592_s18, 1  ;;  %v361_v0 = vld [vmem:[%s715_s3] sm:$0xff]  ;;  %v603_v1 = vmov 0   ;;  %v604_v3 = vmov 1   ;;  %v605_v5 = vmov 0.0   ;;  %s304_s13 = sld [smem:[#allocation4]]  ;;  %v368_v38 = vlaneseq }
  0x1e   : > { %547 = vset.pattern.permute.xlu0 %v603_v1  ;;  %549 = vset.pattern.permute.xlu1 %v603_v1  ;;  %v386_v4 = vld [vmem:[%s716_s4] sm:$0xff]  ;;  %301 = vst [vmem:[#allocation2] sm:$0x1] %v605_v5  ;;  %302 = vst [vmem:[#allocation3] sm:$0x1] %v605_v5  ;;  %s505_s14 = sld [smem:[#allocation4 + $0x1]] }
  0x1f   : > { %s725_s18 = smov (!%p277_p1, %s592_s18), 1  ;;  %364 = vperm.xlu1 %549, %v361_v0   ;;  %v369_v39 = vshrl.u32 %v368_v38, 7 }
  0x20   : > { %s503_s7 = sshll.u32 %s725_s18, 3  ;;  %s289_s17 = scalar_lea.vmem %s713_s1, %s725_s18 }
  0x21   : > { %s283_s10 = scalar_lea.vmem %s712_s0, %s503_s7  ;;  %v506_v6 = vld [vmem:[%s289_s17] ss:$0 sm:$0xff]  ;;  %v370_v41 = vsub.s32 0, %v369_v39  ;;  %s296_s24 = scalar_lea.vmem %s717_s5, %s503_s7 }
  0x22   : > { %v306_v2 = vld [vmem:[%s283_s10] sm:$0xff] }
  0x23   : > { %550 = vset.pattern.permute.xlu1 %v604_v3  ;;  %309 = vperm.xlu0 %547, %v306_v2   ;;  %v320_v9 = vstv %s304_s13 }
  0x24   : > { %375 = vperm.xlu1 %550, %v361_v0   ;;  %v322_v10 = vstv %s505_s14 }
  0x25   : > { %v347_v28 = vld [vmem:[#allocation2] sm:$0x1]  ;;  %v350_v33 = vld [vmem:[#allocation3] sm:$0x1] }
  0x27   : > { %548 = vset.pattern.permute.xlu0 %v604_v3 }
  0x28   : > { %551 = vset.pattern.permute.xlu1 %v603_v1  ;;  %336 = vperm.xlu0 %548, %v306_v2  }
  0x29   : > { %389 = vperm.xlu1 %551, %v386_v4  }
  0x2c   : > { %552 = vset.pattern.permute.xlu0 %v603_v1 }
  0x9a   : > { %v365_v40 = vpop.permute.xlu1 %364 }
  0x9e   : > { %v310_v7 = vpop.permute.xlu0 %309 }
  0x9f   : > { %v318_v8 = vsub.f32 %v310_v7, %v506_v6  ;;  %v376_v43 = vpop.permute.xlu1 %375 }
  0xa1   : > { %v319_v11 = vmul.f32 %v318_v8, %v318_v8 }
  0xa3   : > { %v321_v12 = vmul.f32 %v320_v9, %v319_v11  ;;  %v323_v13 = vmul.f32 %v322_v10, %v319_v11  ;;  %v337_v16 = vpop.permute.xlu0 %336 }
  0xa4   : > { %v390_v50 = vpop.permute.xlu1 %389 }
  0xa5   : > { %v324_v14 = vmul.f32 1.442695, %v321_v12  ;;  %v326_v15 = vmul.f32 1.442695, %v323_v13 }
  0xa7   : > { %553 = vpow2.f32 %v324_v14 }
  0xa8   : > { %555 = vpow2.f32 %v326_v15 }
  0xb4   : > { %v554_v17 = vpop.eup %553 }
  0xb5   : > { %v556_v18 = vpop.eup %555  ;;  %v328_v19 = vrot.slane %v554_v17, 4 }
  0xb6   : > { %v339_v20 = vmul.f32 %v556_v18, %v337_v16 }
  0xb7   : > { %v329_v21 = vadd.f32 %v554_v17, %v328_v19 }
  0xb8   : > { %v340_v22 = vrot.slane %v339_v20, 4 }
  0xb9   : > { %v330_v23 = vrot.slane %v329_v21, 2 }
  0xba   : > { %v341_v24 = vadd.f32 %v340_v22, %v339_v20 }
  0xbb   : > { %v331_v25 = vadd.f32 %v330_v23, %v329_v21 }
  0xbc   : > { %v342_v26 = vrot.slane %v341_v24, 2 }
  0xbd   : > { %v332_v27 = vrot.slane %v331_v25, 1 }
  0xbe   : > { %v343_v29 = vadd.f32 %v342_v26, %v341_v24 }
  0xbf   : > { %v333_v30 = vadd.f32 %v332_v27, %v331_v25 }
  0xc0   : > { %v344_v31 = vrot.slane %v343_v29, 1 }
  0xc1   : > { %v348_v32 = vadd.f32 %v347_v28, %v333_v30 }
  0xc2   : > { %v345_v34 = vadd.f32 %v344_v31, %v343_v29 }
  0xc3   : > { %349 = vst [vmem:[#allocation2] sm:$0x1] %v348_v32 }
  0xc4   : > { %v351_v35 = vadd.f32 %v350_v33, %v345_v34 }
  0xc6   : > { %352 = vst [vmem:[#allocation3] sm:$0x1] %v351_v35 }
  0xca   : > { %v356_v36 = vld [vmem:[#allocation2] sm:$0x1] }
  0xcb   : > { %v358_v37 = vadd.f32 1e-08, %v356_v36  ;;  %v371_v45 = vrot.slane %v356_v36, %v370_v41 }
  0xcd   : > { %557 = vrcp.f32 %v358_v37  ;;  %v357_v44 = vld [vmem:[#allocation3] sm:$0x1]  ;;  %v373_v48 = vmul.f32 %v371_v45, %v365_v40 }
  0xda   : > { %v558_v42 = vpop.eup %557 }
  0xdb   : > { %v360_v46 = vmul.f32 %v558_v42, %v357_v44 }
  0xdd   : > { %v382_v47 = vrot.slane %v360_v46, %v370_v41 }
  0xdf   : > { %v384_v49 = vmul.f32 %v382_v47, %v376_v43 }
  0xe1   : > { %v385_v51 = vadd.f32 %v384_v49, %v373_v48 }
  0xe3   : > { %v392_v52 = vadd.f32 %v390_v50, %v385_v51 }
  0xe5   : > { %393 = vst [vmem:[%s296_s24] sm:$0xff] %v392_v52 }
  0xe6 PF: > { %s16_s20 = sadd.s32 1, %s600_s20   ;;  %s720_s18 = smov %s596_s19 }
  0xe7   : > { %p13_p2 = scmp.ge.s32.totalorder %s16_s20, 4   ;;  %s721_s19 = smov %s723_s22 }
  0xe9   :  { %15 = sbr.rel (!%p13_p2) target bundleno = 2 (0x2), region = 86 }
  0xee   :  { %419 = vsyncpa [#allocation5], 1 }
  0xef   :  { %421 = vsyncpa [#allocation5 + $0x1], 1 }

</bundles_post_ra>
